<compile_context>
chip_gen: v7x
topology: tpu7x:2x2x1
jax: 0.10.0
libtpu: 0.0.40
codegen_flags: <defaults>
</compile_context>

<pallas_src>
import jax
import jax.numpy as jnp
from jax.experimental import pallas as pl
from jax.experimental.pallas import tpu as pltpu


def _nest_mlp_kernel(xt_ref, w1_ref, b1_ref, w2_ref, b2_ref, w3_ref, b3_ref,
                     ot_ref):
    # All activations are (features, TB): batch on the lane axis.
    xt = xt_ref[...]                                                    # (20, TB)
    h1 = jnp.dot(w1_ref[...], xt, preferred_element_type=jnp.float32)   # (64, TB)
    h1 = jnp.maximum(h1 + b1_ref[...], 0.0)
    h2 = jnp.dot(w2_ref[...], h1, preferred_element_type=jnp.float32)   # (32, TB)
    h2 = jnp.maximum(h2 + b2_ref[...], 0.0)
    out = jnp.dot(w3_ref[...], h2, preferred_element_type=jnp.float32)  # (16, TB)
    ot_ref[...] = (out + b3_ref[...]).astype(ot_ref.dtype)


def nest_mlp_ref(x, p):
    """Pure-jnp reference (PyTorch semantics: y = x @ W.T + b)."""
    h1 = jnp.maximum(x @ p["W1"].T + p["b1"].T, 0.0)
    h2 = jnp.maximum(h1 @ p["W2"].T + p["b2"].T, 0.0)
    return h2 @ p["W3"].T + p["b3"].T


def _round_up(n, m):
    return -(-n // m) * m


def nest_mlp(x, params, *, tb=2048, min_pallas_batch=256):
    """x: (B, 20) float32. params: W* as (out,in), b* as (out,1) (PyTorch layout)."""
    B = x.shape[0]
    if B < min_pallas_batch:
        # Kernel launch + DMA setup dominate at toy sizes; use XLA directly.
        return nest_mlp_ref(x, params)

    if tb % 128 != 0:
        raise ValueError("tb must be a multiple of 128 (lane width)")

    w1, b1 = params["W1"], params["b1"]
    w2, b2 = params["W2"], params["b2"]
    w3, b3 = params["W3"], params["b3"]

    # Adaptive tile: never tile wider than the (lane-rounded) batch itself.
    tb_eff = min(tb, _round_up(B, 128))
    n_tiles = -(-B // tb_eff)          # ceil(B / tb_eff)
    b_pad = n_tiles * tb_eff

    # Batch to the last (lane) axis; zero-pad the tail tile. Padded columns
    # compute garbage-free values (relu(b)...) and are sliced off below.
    xt = jnp.pad(x.T, ((0, 0), (0, b_pad - B)))            # (20, b_pad)

    # Whole-array blocks with constant index_map: stay resident in VMEM.
    resident = lambda a: pl.BlockSpec(a.shape, lambda i: (0, 0))

    out_t = pl.pallas_call(
        _nest_mlp_kernel,
        out_shape=jax.ShapeDtypeStruct((16, b_pad), x.dtype),
        grid=(n_tiles,),
        in_specs=[
            pl.BlockSpec((20, tb_eff), lambda i: (0, i)),  # streamed x tiles
            resident(w1), resident(b1),
            resident(w2), resident(b2),
            resident(w3), resident(b3),
        ],
        out_specs=pl.BlockSpec((16, tb_eff), lambda i: (0, i)),
        compiler_params=pltpu.CompilerParams(
            dimension_semantics=("parallel",)),
    )(xt, w1, b1, w2, b2, w3, b3)

    return out_t[:, :B].T                                  # (B, 16)


def init_params(key):
    """PyTorch nn.Linear default init: U(-1/sqrt(fan_in), 1/sqrt(fan_in)).
    Weights stored as (out, in), biases as (out, 1) columns (batch-on-lanes
    friendly)."""
    def linear(key, fan_in, fan_out):
        kw, kb = jax.random.split(key)
        bound = 1.0 / jnp.sqrt(fan_in)
        w = jax.random.uniform(kw, (fan_out, fan_in), jnp.float32, -bound, bound)
        b = jax.random.uniform(kb, (fan_out, 1), jnp.float32, -bound, bound)
        return w, b

    k1, k2, k3 = jax.random.split(key, 3)
    w1, b1 = linear(k1, 20, 64)
    w2, b2 = linear(k2, 64, 32)
    w3, b3 = linear(k3, 32, 16)
    return {"W1": w1, "b1": b1, "W2": w2, "b2": b2, "W3": w3, "b3": b3}


if __name__ == "__main__":
    key = jax.random.PRNGKey(0)
    kx, kp = jax.random.split(key)
    params = init_params(kp)

    # Multi-tile grid with a ragged tail: B=300, tb=128 -> 3 tiles, pad to 384.
    B = 300
    x = jax.random.normal(kx, (B, 20), jnp.float32)
    out = jax.block_until_ready(nest_mlp(x, params, tb=128, min_pallas_batch=128))
    ref = nest_mlp_ref(x, params)
    assert out.shape == (B, 16), out.shape
    assert jnp.allclose(out, ref, atol=1e-4, rtol=1e-4), "mismatch vs reference"

    # Single adaptive tile (default tb=2048 shrinks to 384 lanes for B=300).
    out1 = jax.block_until_ready(nest_mlp(x, params, min_pallas_batch=128))
    assert jnp.allclose(out1, ref, atol=1e-4, rtol=1e-4), "mismatch (adaptive tile)"

    # Tiny batch dispatches to the plain-jnp fast path.
    x_small = jax.random.normal(kx, (8, 20), jnp.float32)
    out_small = jax.block_until_ready(nest_mlp(x_small, params))
    assert out_small.shape == (8, 16)
    assert jnp.allclose(out_small, nest_mlp_ref(x_small, params),
                        atol=1e-4, rtol=1e-4)

    print("KERNEL_OK")
</pallas_src>

<mosaic_0001>
module attributes {stable_mosaic.version = 11 : i64} {
  func.func @_nest_mlp_kernel(%arg0: i32, %arg1: memref<20x128xf32, #tpu.memory_space<vmem>>, %arg2: memref<64x20xf32, #tpu.memory_space<vmem>>, %arg3: memref<64x1xf32, #tpu.memory_space<vmem>>, %arg4: memref<32x64xf32, #tpu.memory_space<vmem>>, %arg5: memref<32x1xf32, #tpu.memory_space<vmem>>, %arg6: memref<16x32xf32, #tpu.memory_space<vmem>>, %arg7: memref<16x1xf32, #tpu.memory_space<vmem>>, %arg8: memref<16x128xf32, #tpu.memory_space<vmem>>) attributes {dimension_semantics = [#tpu.dimension_semantics<parallel>], iteration_bounds = array<i64: 3>, scalar_prefetch = 0 : i64, scratch_operands = 0 : i64, tpu.core_type = #tpu.core_type<tc>, window_params = [{transform_indices = @transform_0, window_bounds = array<i64: 20, 128>}, {pipeline_mode = #tpu.pipeline_mode<synchronous>, transform_indices = @transform_1, window_bounds = array<i64: 64, 20>}, {pipeline_mode = #tpu.pipeline_mode<synchronous>, transform_indices = @transform_2, window_bounds = array<i64: 64, 1>}, {pipeline_mode = #tpu.pipeline_mode<synchronous>, transform_indices = @transform_3, window_bounds = array<i64: 32, 64>}, {pipeline_mode = #tpu.pipeline_mode<synchronous>, transform_indices = @transform_4, window_bounds = array<i64: 32, 1>}, {pipeline_mode = #tpu.pipeline_mode<synchronous>, transform_indices = @transform_5, window_bounds = array<i64: 16, 32>}, {pipeline_mode = #tpu.pipeline_mode<synchronous>, transform_indices = @transform_6, window_bounds = array<i64: 16, 1>}, {transform_indices = @transform_7, window_bounds = array<i64: 16, 128>}]} {
    %c0 = arith.constant 0 : index
    %c0_0 = arith.constant 0 : index
    %0 = vector.load %arg1[%c0, %c0_0] : memref<20x128xf32, #tpu.memory_space<vmem>>, vector<20x128xf32>
    %c0_1 = arith.constant 0 : index
    %c0_2 = arith.constant 0 : index
    %1 = vector.load %arg2[%c0_1, %c0_2] : memref<64x20xf32, #tpu.memory_space<vmem>>, vector<64x20xf32>
    %cst = arith.constant dense<0.000000e+00> : vector<64x128xf32>
    %2 = tpu.matmul %1, %0, %cst {dimension_numbers = #tpu.dot_dimension_numbers<[1], [0], [0], [1], [0, 0, 1, 1], [], []>} : vector<64x20xf32>, vector<20x128xf32>, vector<64x128xf32> -> vector<64x128xf32>
    %c0_3 = arith.constant 0 : index
    %c0_4 = arith.constant 0 : index
    %3 = vector.load %arg3[%c0_3, %c0_4] : memref<64x1xf32, #tpu.memory_space<vmem>>, vector<64x1xf32>
    %4 = vector.broadcast %3 : vector<64x1xf32> to vector<64x128xf32>
    %5 = arith.addf %2, %4 : vector<64x128xf32>
    %cst_5 = arith.constant 0.000000e+00 : f32
    %6 = vector.broadcast %cst_5 : f32 to vector<64x128xf32>
    %7 = arith.maximumf %5, %6 : vector<64x128xf32>
    %c0_6 = arith.constant 0 : index
    %c0_7 = arith.constant 0 : index
    %8 = vector.load %arg4[%c0_6, %c0_7] : memref<32x64xf32, #tpu.memory_space<vmem>>, vector<32x64xf32>
    %cst_8 = arith.constant dense<0.000000e+00> : vector<32x128xf32>
    %9 = tpu.matmul %8, %7, %cst_8 {dimension_numbers = #tpu.dot_dimension_numbers<[1], [0], [0], [1], [0, 0, 1, 1], [], []>} : vector<32x64xf32>, vector<64x128xf32>, vector<32x128xf32> -> vector<32x128xf32>
    %c0_9 = arith.constant 0 : index
    %c0_10 = arith.constant 0 : index
    %10 = vector.load %arg5[%c0_9, %c0_10] : memref<32x1xf32, #tpu.memory_space<vmem>>, vector<32x1xf32>
    %11 = vector.broadcast %10 : vector<32x1xf32> to vector<32x128xf32>
    %12 = arith.addf %9, %11 : vector<32x128xf32>
    %cst_11 = arith.constant 0.000000e+00 : f32
    %13 = vector.broadcast %cst_11 : f32 to vector<32x128xf32>
    %14 = arith.maximumf %12, %13 : vector<32x128xf32>
    %c0_12 = arith.constant 0 : index
    %c0_13 = arith.constant 0 : index
    %15 = vector.load %arg6[%c0_12, %c0_13] : memref<16x32xf32, #tpu.memory_space<vmem>>, vector<16x32xf32>
    %cst_14 = arith.constant dense<0.000000e+00> : vector<16x128xf32>
    %16 = tpu.matmul %15, %14, %cst_14 {dimension_numbers = #tpu.dot_dimension_numbers<[1], [0], [0], [1], [0, 0, 1, 1], [], []>} : vector<16x32xf32>, vector<32x128xf32>, vector<16x128xf32> -> vector<16x128xf32>
    %c0_15 = arith.constant 0 : index
    %c0_16 = arith.constant 0 : index
    %17 = vector.load %arg7[%c0_15, %c0_16] : memref<16x1xf32, #tpu.memory_space<vmem>>, vector<16x1xf32>
    %18 = vector.broadcast %17 : vector<16x1xf32> to vector<16x128xf32>
    %19 = arith.addf %16, %18 : vector<16x128xf32>
    %c0_17 = arith.constant 0 : index
    %c0_18 = arith.constant 0 : index
    %20 = vector.load %arg8[%c0_17, %c0_18] : memref<16x128xf32, #tpu.memory_space<vmem>>, vector<16x128xf32>
    tpu.vector_store %arg8[%c0_17, %c0_18], %19 {strides = array<i32>} : memref<16x128xf32, #tpu.memory_space<vmem>>, vector<16x128xf32>,
    return
  }
  func.func @transform_0(%arg0: i32) -> (i32, i32) {
    %c0_i32 = arith.constant 0 : i32
    %c0_i32_0 = arith.constant 0 : i32
    return %c0_i32, %arg0 : i32, i32
  }
  func.func @transform_1(%arg0: i32) -> (i32, i32) {
    %c0_i32 = arith.constant 0 : i32
    %c0_i32_0 = arith.constant 0 : i32
    %c0_i32_1 = arith.constant 0 : i32
    return %c0_i32, %c0_i32_0 : i32, i32
  }
  func.func @transform_2(%arg0: i32) -> (i32, i32) {
    %c0_i32 = arith.constant 0 : i32
    %c0_i32_0 = arith.constant 0 : i32
    %c0_i32_1 = arith.constant 0 : i32
    return %c0_i32, %c0_i32_0 : i32, i32
  }
  func.func @transform_3(%arg0: i32) -> (i32, i32) {
    %c0_i32 = arith.constant 0 : i32
    %c0_i32_0 = arith.constant 0 : i32
    %c0_i32_1 = arith.constant 0 : i32
    return %c0_i32, %c0_i32_0 : i32, i32
  }
  func.func @transform_4(%arg0: i32) -> (i32, i32) {
    %c0_i32 = arith.constant 0 : i32
    %c0_i32_0 = arith.constant 0 : i32
    %c0_i32_1 = arith.constant 0 : i32
    return %c0_i32, %c0_i32_0 : i32, i32
  }
  func.func @transform_5(%arg0: i32) -> (i32, i32) {
    %c0_i32 = arith.constant 0 : i32
    %c0_i32_0 = arith.constant 0 : i32
    %c0_i32_1 = arith.constant 0 : i32
    return %c0_i32, %c0_i32_0 : i32, i32
  }
  func.func @transform_6(%arg0: i32) -> (i32, i32) {
    %c0_i32 = arith.constant 0 : i32
    %c0_i32_0 = arith.constant 0 : i32
    %c0_i32_1 = arith.constant 0 : i32
    return %c0_i32, %c0_i32_0 : i32, i32
  }
  func.func @transform_7(%arg0: i32) -> (i32, i32) {
    %c0_i32 = arith.constant 0 : i32
    %c0_i32_0 = arith.constant 0 : i32
    return %c0_i32, %arg0 : i32, i32
  }
}

</mosaic_0001>

<bundles_post_ra>
// kernel: tpu_custom_call.1
= control target key start
LH: loop header
LB: loop body
LE: loop exit
PB: predicated region body
PF: predicated region fallthrough
CT: control target
= control target key end

     0   :  { %12 = vsyncpa [#allocation4], 0  ;;  %s1325_s0 = inlined_call_operand.vmem [shape: f32[20,384], index: 0, kind: input, shape index: {}]   ;;  %s1326_s1 = inlined_call_operand.vmem [shape: f32[64,20], index: 1, kind: input, shape index: {}]   ;;  %s1327_s2 = inlined_call_operand.vmem [shape: f32[64,1], index: 2, kind: input, shape index: {}]   ;;  %s1328_s3 = inlined_call_operand.vmem [shape: f32[32,64], index: 3, kind: input, shape index: {}]   ;;  %s1329_s4 = inlined_call_operand.vmem [shape: f32[32,1], index: 4, kind: input, shape index: {}]   ;;  %s1330_s5 = inlined_call_operand.vmem [shape: f32[16,32], index: 5, kind: input, shape index: {}]   ;;  %s1331_s6 = inlined_call_operand.vmem [shape: f32[16,1], index: 6, kind: input, shape index: {}]   ;;  %s1332_s7 = inlined_call_operand.hbm [shape: f32[16,384], index: 7, kind: output, shape index: {}]  }
   0x1   :  { %14 = vsyncpa [#allocation4 + $0x1], 0  ;;  %s1118_s24 = smov 0   ;;  %s1120_s25 = smov 0  }
   0x2   :  { %s1122_s26 = smov 0   ;;  %s1124_s27 = smov 0  }
   0x3 LB: > { %s828_s28 = sadd.s32 4294967295, %s1071_s27   ;;  %s829_s29 = sadd.s32 4294967294, %s1071_s27   ;;  %s1071_s27 = sphi %s1124_s27, %s1338_s27   ;;  %s1067_s26 = sphi %s1122_s26, %s1337_s26   ;;  %s1063_s25 = sphi %s1120_s25, %s1336_s25   ;;  %s1059_s24 = sphi %s1118_s24, %s1335_s24  }
   0x4   : > { %s1141_s30 = sadd.s32 1, %s1071_s27   ;;  %s27_s8 = sadd.s32 1, %s1067_s26 }
   0x5   : > { %s24_s9 = ssub.s32 %s1071_s27, %s1141_s30  ;;  %p34_p0 = scmp.ne.s32.totalorder %s1067_s26, %s1063_s25 }
   0x6   : > { %p25_p1 = scmp.eq.s32.totalorder %s24_s9, 0  ;;  %p35_p2 = scmp.eq.s32.totalorder %s1071_s27, 0 }
   0x7   : > { %p190_p3 = scmp.eq.s32.totalorder %s828_s28, 2  ;;  %p195_p4 = scmp.ne.s32.totalorder %s1063_s25, %s1059_s24 }
   0x8   : > { %s1154_s10 = scalar_select %p25_p1, %s1067_s26, %s27_s8  }
   0x9   : > { %p36_p5 = por %p35_p2, %p34_p0  ;;  %p1156_p6 = por %p190_p3, %p34_p0 }
   0xa   : > { %p196_p7 = scmp.eq.s32.totalorder %s829_s29, 2  ;;  %p831_p9 = scmp.ge.s32.totalorder %s1071_s27, 3 }
   0xc   : > { %p1160_p8 = por %p196_p7, %p195_p4  ;;  %230 = sbr.rel (%p831_p9) target bundleno = 26 (0x1a), region = 40 }
  0x13   : > { %233 = sbr.rel (!%p36_p5) target bundleno = 26 (0x1a), region = 44  ;;  %s235_s13 = sand.u32 (%p36_p5), 1, %s1067_s26  }
  0x14   : > { %s832_s14 = sshll.u32 (%p36_p5), %s1071_s27, 3  ;;  %s962_s15 = smul.u32 (%p36_p5), 24, %s235_s13 }
  0x15   : > { %s239_s18 = scalar_lea.vmem (%p36_p5), %s1325_s0, %s832_s14 }
  0x16   : > { %v271_v0 = vld [vmem:[%s239_s18] sm:$0xff] (%p36_p5)  ;;  %v273_v1 = vld [vmem:[%s239_s18 + $0x18] sm:$0xff] (%p36_p5)  ;;  %v275_v2 = vld [vmem:[%s239_s18 + $0x30] sm:$0xff] (%p36_p5)  ;;  %s237_s19 = scalar_lea.vmem (%p36_p5), [#allocation2], %s962_s15 }
  0x17   : > { %272 = vst [vmem:[%s237_s19] sm:$0xff] (%p36_p5), %v271_v0  ;;  %274 = vst [vmem:[%s237_s19 + $0x8] sm:$0xff] (%p36_p5), %v273_v1 }
  0x18   : > { %276 = vst [vmem:[%s237_s19 + $0x10] sm:$0xff] (%p36_p5), %v275_v2 }
  0x1a PF: > { %p833_p10 = scmp.ge.s32.totalorder %s1071_s27, 1  ;;  %p281_p11 = scmp.lt.s32.totalorder %s1071_s27, 4 }
  0x1c   : > { %p282_p12 = pnand %p833_p10, %p281_p11 }
  0x1d   : > { %s1173_s20 = sand.u32 (!%p282_p12), 1, %s1063_s25   ;;  %v322_v3 = vld [vmem:[%s1326_s1] sm:$0xff] (!%p282_p12)  ;;  %vm378_vm0 = vcmask (!%p282_p12), 162816   ;;  %v1073_v4 = vmov (!%p282_p12), 0   ;;  %v332_v6 = vld [vmem:[%s1327_s2 + $0x10] sm:$0xff] (!%p282_p12)  ;;  %v331_v9 = vld [vmem:[%s1327_s2 + $0x8] sm:$0xff] (!%p282_p12) }
  0x1e   : > { %285 = sbr.rel (%p282_p12) target bundleno = 736 (0x2e0), region = 82  ;;  %889 = vmatprep.mubr.msk.f32.mxu0 (!%p282_p12), %vm378_vm0, %v322_v3  ;;  %1007 = vset.pattern.permute.xlu0 (!%p282_p12), %v1073_v4  ;;  %v330_v5 = vld [vmem:[%s1327_s2] sm:$0xff] (!%p282_p12)  ;;  %v333_v11 = vld [vmem:[%s1327_s2 + $0x18] sm:$0xff] (!%p282_p12)  ;;  %vm403_vm1 = vcmask (!%p282_p12), 1043456   ;;  %v335_v14 = vld [vmem:[%s1327_s2 + $0x28] sm:$0xff] (!%p282_p12)  ;;  %vm548_vm2 = vcmask (!%p282_p12), 523264  }
  0x1f   : > { %s963_s23 = smul.u32 (!%p282_p12), 24, %s1173_s20  ;;  %1008 = vset.pattern.permute.xlu1 (!%p282_p12), %v1073_v4  ;;  %340 = vperm.xlu0 (!%p282_p12), %1007, %v330_v5   ;;  %v334_v13 = vld [vmem:[%s1327_s2 + $0x20] sm:$0xff] (!%p282_p12)  ;;  %v323_v15 = vld [vmem:[%s1326_s1 + $0x8] sm:$0xff] (!%p282_p12)  ;;  %v324_v16 = vld [vmem:[%s1326_s1 + $0x10] sm:$0xff] (!%p282_p12)  ;;  %vm664_vm3 = vcmask (!%p282_p12), 261120   ;;  %s834_s13 = sshll.u32 (!%p282_p12), %s1173_s20, 4 }
  0x20   : > { %350 = vperm.xlu1 (!%p282_p12), %1008, %v332_v6   ;;  %v336_v17 = vld [vmem:[%s1327_s2 + $0x30] sm:$0xff] (!%p282_p12)  ;;  %v337_v18 = vld [vmem:[%s1327_s2 + $0x38] sm:$0xff] (!%p282_p12)  ;;  %v326_v20 = vld [vmem:[%s1326_s1 + $0x20] sm:$0xff] (!%p282_p12)  ;;  %s851_s16 = sshll.u32 (!%p282_p12), %s828_s28, 7  ;;  %s749_s21 = scalar_lea.sflag (!%p282_p12), [#allocation4], %s1173_s20 }
  0x21   : > { %s290_s14 = scalar_lea.vmem (!%p282_p12), [#allocation2], %s963_s23  ;;  %v325_v19 = vld [vmem:[%s1326_s1 + $0x18] sm:$0xff] (!%p282_p12)  ;;  %v524_v21 = vld [vmem:[%s1329_s4] sm:$0xff] (!%p282_p12)  ;;  %v525_v22 = vld [vmem:[%s1329_s4 + $0x8] sm:$0xff] (!%p282_p12)  ;;  %s1282_s19 = scalar_lea.hbm (!%p282_p12), %s1332_s7, %s851_s16 }
  0x22   : > { %v319_v7 = vld [vmem:[%s290_s14] sm:$0xff] (!%p282_p12)  ;;  %v320_v8 = vld [vmem:[%s290_s14 + $0x8] sm:$0xff] (!%p282_p12)  ;;  %v321_v12 = vld [vmem:[%s290_s14 + $0x10] sm:$0xf] (!%p282_p12)  ;;  %s318_s14 = scalar_lea.vmem (!%p282_p12), [#allocation3], %s834_s13  ;;  %s1074_s22 = smov (!%p282_p12), [#allocation3]  }
  0x23   : > { %v934_v10 = vpack.c.bf16 (!%p282_p12), %v320_v8, %v319_v7  ;;  %345 = vperm.xlu0 (!%p282_p12), %1007, %v331_v9   ;;  %v327_v23 = vld [vmem:[%s1326_s1 + $0x28] sm:$0xff] (!%p282_p12)  ;;  %v328_v24 = vld [vmem:[%s1326_s1 + $0x30] sm:$0xff] (!%p282_p12)  ;;  %v527_v26 = vld [vmem:[%s1329_s4 + $0x18] sm:$0xff] (!%p282_p12)  ;;  %s761_s15 = sshll.u32 (!%p282_p12), %s318_s14, 4  ;;  %s1013_s23 = sshll.u32 (!%p282_p12), %s1074_s22, 4  ;;  %s1277_s15 = int_to_ptr.vmem [resolvable:$true] %s761_s15  ;;  %s1014_s23 = int_to_ptr.vmem [resolvable:$false] %s1013_s23 }
  0x24   : > { %355 = vperm.xlu1 (!%p282_p12), %1008, %v333_v11   ;;  %v526_v25 = vld [vmem:[%s1329_s4 + $0x10] sm:$0xff] (!%p282_p12)  ;;  %v329_v27 = vld [vmem:[%s1326_s1 + $0x38] sm:$0xff] (!%p282_p12)  ;;  %v652_v28 = vld [vmem:[%s1331_s6] sm:$0xff] (!%p282_p12)  ;;  %s1009_s28 = scalar_lea.vmem (!%p282_p12), %s1277_s15, 256  ;;  %s1015_s29 = scalar_lea.vmem (!%p282_p12), %s1014_s23, 512 }
  0x25   : > { %935 = vmatprep.subr.bf16.mxu0 %v934_v10  ;;  %v653_v29 = vld [vmem:[%s1331_s6 + $0x8] sm:$0xff]  ;;  %v520_v30 = vld [vmem:[%s1328_s3] sm:$0xff]  ;;  %v522_v4 = vld [vmem:[%s1328_s3 + $0x10] sm:$0xff]  ;;  %p1010_p13 = scmp.ne.s32.totalorder %s1277_s15, %s1009_s28  ;;  %p1016_p2 = scmp.lt.s32.totalorder %s1277_s15, %s1014_s23 }
  0x26   : > { %937 = vmatpush3.bf16.msra.mxu0 %v934_v10  ;;  %917 = vmatprep.mubr.msk.f32.mxu1 %vm548_vm2, %v520_v30  ;;  %v521_v3 = vld [vmem:[%s1328_s3 + $0x8] sm:$0xff]  ;;  %v523_v5 = vld [vmem:[%s1328_s3 + $0x18] sm:$0xff]  ;;  %v650_v6 = vld [vmem:[%s1330_s5] sm:$0xff]  ;;  %p1017_p3 = scmp.lt.s32.totalorder %s1015_s29, %s1009_s28 }
  0x27   : > { %887 = vmatprep.subr.msk.mxu0 %vm403_vm1, %v321_v12  ;;  %360 = vperm.xlu0 %1007, %v334_v13   ;;  %p1011_p0 = pnand %p1010_p13, %p1156_p6 }
  0x28   : > { %365 = vperm.xlu1 %1008, %v335_v14   ;;  %p1018_p4 = por %p1017_p3, %p1016_p2 }
  0x29   : > { %p1012_p1 = pneg %p1011_p0 }
  0x2a   : > { %888 = vmatpush3.msk.msra.mxu0 %vm403_vm1, %v321_v12 }
  0x2b   : > { %890 = vmatmul.mubr.msk.f32.vlgmr.msra.gmra.mrb[0].mxu0 %vm378_vm0, %v323_v15  ;;  %370 = vperm.xlu0 %1007, %v336_v17   ;;  %p1019_p5 = pnand %p1018_p4, %p1012_p1 }
  0x2c   : > { %892 = vmatprep.mubr.msk.f32.mxu0 %vm378_vm0, %v324_v16  ;;  %375 = vperm.xlu1 %1008, %v337_v18  }
  0x2f   : > { %893 = vmatmul.mubr.msk.f32.gmra.mrb[2].mxu0 %vm378_vm0, %v325_v19  ;;  %530 = vperm.xlu0 %1007, %v524_v21  }
  0x30   : > { %895 = vmatprep.mubr.msk.f32.mxu0 %vm378_vm0, %v326_v20  ;;  %535 = vperm.xlu1 %1008, %v525_v22  }
  0x33   : > { %896 = vmatmul.mubr.msk.f32.gmra.mrb[4].mxu0 %vm378_vm0, %v327_v23  ;;  %540 = vperm.xlu0 %1007, %v526_v25   ;;  %v651_v25 = vld [vmem:[%s1330_s5 + $0x8] sm:$0xff] }
  0x34   : > { %898 = vmatprep.mubr.msk.f32.mxu0 %vm378_vm0, %v328_v24  ;;  %545 = vperm.xlu1 %1008, %v527_v26  }
  0x37   : > { %899 = vmatmul.mubr.msk.f32.gmra.mrb[6].mxu0 %vm378_vm0, %v329_v27  ;;  %656 = vperm.xlu0 %1007, %v652_v28  }
  0x38   : > { %661 = vperm.xlu1 %1008, %v653_v29   ;;  %931 = vmatprep.mubr.msk.f32.mxu0 %vm664_vm3, %v650_v6 }
  0x9e   : > { %v341_v31 = vpop.permute.xlu0 %340 }
  0x9f   : > { %v351_v32 = vpop.permute.xlu1 %350 }
  0xa2   : > { %v346_v33 = vpop.permute.xlu0 %345 }
  0xa3   : > { %v356_v34 = vpop.permute.xlu1 %355 }
  0xa6   : > { %v361_v47 = vpop.permute.xlu0 %360 }
  0xa7   : > { %v366_v44 = vpop.permute.xlu1 %365 }
  0xaa   : > { %v371_v59 = vpop.permute.xlu0 %370 }
  0xab   : > { %v376_v56 = vpop.permute.xlu1 %375 }
  0xae   : > { %v531_v8 = vpop.permute.xlu0 %530 }
  0xaf   : > { %v536_v7 = vpop.permute.xlu1 %535 }
  0xb2   : > { %v541_v17 = vpop.permute.xlu0 %540 }
  0xb3   : > { %v546_v14 = vpop.permute.xlu1 %545 }
  0xb6   : > { %v657_v28 = vpop.permute.xlu0 %656 }
  0xb7   : > { %v662_v26 = vpop.permute.xlu1 %661 }
  0xfe   : > { %v891_v35 = vpop.f32.mrb[0].mxu0 }
  0xff   : > { %v479_v36 = vadd.f32 %v891_v35, %v346_v33  ;;  %v473_v37 = vpop.f32.mrb[1].mxu0 }
 0x100   : > { %v474_v38 = vadd.f32 %v473_v37, %v341_v31 }
 0x101   : > { %v513_v39 = vmax.f32 %v479_v36, 0.0 }
 0x102   : > { %v512_v40 = vmax.f32 %v474_v38, 0.0  ;;  %v894_v41 = vpop.f32.mrb[2].mxu0 }
 0x103   : > { %v489_v42 = vadd.f32 %v894_v41, %v356_v34  ;;  %v483_v43 = vpop.f32.mrb[3].mxu0 }
 0x104   : > { %v484_v45 = vadd.f32 %v483_v43, %v351_v32  ;;  %v938_v46 = vpack.c.bf16 %v513_v39, %v512_v40 }
 0x105   : > { %v515_v48 = vmax.f32 %v489_v42, 0.0 }
 0x106   : > { %v514_v49 = vmax.f32 %v484_v45, 0.0  ;;  %v897_v50 = vpop.f32.mrb[4].mxu0  ;;  %939 = vmatprep.subr.bf16.mxu1 %v938_v46 }
 0x107   : > { %v499_v51 = vadd.f32 %v897_v50, %v366_v44  ;;  %v493_v52 = vpop.f32.mrb[5].mxu0  ;;  %941 = vmatpush3.bf16.msra.mxu1 %v938_v46 }
 0x108   : > { %v942_v53 = vpack.c.bf16 %v515_v48, %v514_v49  ;;  %v494_v54 = vadd.f32 %v493_v52, %v361_v47 }
 0x109   : > { %v517_v55 = vmax.f32 %v499_v51, 0.0 }
 0x10a   : > { %v516_v57 = vmax.f32 %v494_v54, 0.0  ;;  %v900_v58 = vpop.f32.mrb[6].mxu0  ;;  %943 = vmatprep.subr.bf16.mxu1 %v942_v53 }
 0x10b   : > { %v509_v60 = vadd.f32 %v900_v58, %v376_v56  ;;  %v503_v61 = vpop.f32.mrb[7].mxu0  ;;  %945 = vmatpush3.bf16.msra.mxu1 %v942_v53 }
 0x10c   : > { %v946_v62 = vpack.c.bf16 %v517_v55, %v516_v57  ;;  %v504_v63 = vadd.f32 %v503_v61, %v371_v59 }
 0x10d   : > { %v519_v0 = vmax.f32 %v509_v60, 0.0 }
 0x10e   : > { %v518_v1 = vmax.f32 %v504_v63, 0.0  ;;  %947 = vmatprep.subr.bf16.mxu1 %v946_v62 }
 0x10f   : > { %949 = vmatpush3.bf16.msra.mxu1 %v946_v62 }
 0x110   : > { %v950_v2 = vpack.c.bf16 %v519_v0, %v518_v1 }
 0x112   : > { %951 = vmatprep.subr.bf16.mxu1 %v950_v2 }
 0x113   : > { %953 = vmatpush3.bf16.msra.mxu1 %v950_v2 }
 0x116   : > { %918 = vmatmul.mubr.msk.f32.vlgmr.msra.gmra.mrb[0].mxu1 %vm548_vm2, %v521_v3 }
 0x117   : > { %920 = vmatprep.mubr.msk.f32.mxu1 %vm548_vm2, %v522_v4 }
 0x11a   : > { %921 = vmatmul.mubr.msk.f32.gmra.mrb[2].mxu1 %vm548_vm2, %v523_v5 }
 0x1e9   : > { %v919_v9 = vpop.f32.mrb[0].mxu1 }
 0x1ea   : > { %v633_v10 = vadd.f32 %v919_v9, %v536_v7  ;;  %v627_v11 = vpop.f32.mrb[1].mxu1 }
 0x1eb   : > { %v628_v12 = vadd.f32 %v627_v11, %v531_v8 }
 0x1ec   : > { %v647_v13 = vmax.f32 %v633_v10, 0.0 }
 0x1ed   : > { %v646_v15 = vmax.f32 %v628_v12, 0.0  ;;  %v922_v16 = vpop.f32.mrb[2].mxu1 }
 0x1ee   : > { %v643_v18 = vadd.f32 %v922_v16, %v546_v14  ;;  %v637_v19 = vpop.f32.mrb[3].mxu1 }
 0x1ef   : > { %v954_v20 = vpack.c.bf16 %v647_v13, %v646_v15  ;;  %v638_v21 = vadd.f32 %v637_v19, %v541_v17 }
 0x1f0   : > { %v649_v22 = vmax.f32 %v643_v18, 0.0 }
 0x1f1   : > { %v648_v23 = vmax.f32 %v638_v21, 0.0  ;;  %955 = vmatprep.subr.bf16.mxu0 %v954_v20 }
 0x1f2   : > { %957 = vmatpush3.bf16.msra.mxu0 %v954_v20 }
 0x1f3   : > { %v958_v24 = vpack.c.bf16 %v649_v22, %v648_v23 }
 0x1f5   : > { %959 = vmatprep.subr.bf16.mxu0 %v958_v24 }
 0x1f6   : > { %961 = vmatpush3.bf16.msra.mxu0 %v958_v24 }
 0x1f9   : > { %932 = vmatmul.mubr.msk.f32.vlgmr.msra.gmra.mrb[8].mxu0 %vm664_vm3, %v651_v25 }
 0x2cc   : > { %v933_v27 = vpop.f32.mrb[8].mxu0 }
 0x2cd   : > { %v743_v29 = vadd.f32 %v933_v27, %v662_v26  ;;  %v737_v30 = vpop.f32.mrb[9].mxu0 }
 0x2ce   : > { %v738_v31 = vadd.f32 %v737_v30, %v657_v28 }
 0x2cf   : > { %747 = vst [vmem:[%s318_s14 + $0x8] sm:$0xff] %v743_v29 }
 0x2d0   : > { %746 = vst [vmem:[%s318_s14] sm:$0xff] %v738_v31 }
 0x2d1   : > { %1022 = shalt.err (!%p1019_p5)
}
 0x2d2   : > { %s1023_s8 = scalar_lea.hbm %s1282_s19, 256  ;;  %s1027_s14 = scalar_lea.hbm %s1332_s7, 768 }
 0x2d3   : > { %p1024_p7 = scmp.ne.s32.totalorder %s1282_s19, %s1023_s8  ;;  %p1028_p11 = scmp.lt.u32.totalorder %s1282_s19, %s1332_s7 }
 0x2d4   : > { %p1029_p12 = scmp.lt.u32.totalorder %s1027_s14, %s1023_s8  ;;  %p1031_p0 = scmp.lt.u32.totalorder %s1023_s8, %s1282_s19 }
 0x2d5   : > { %p1025_p9 = pnand %p1024_p7, %p1156_p6 }
 0x2d6   : > { %p1030_p13 = por %p1029_p12, %p1028_p11 }
 0x2d7   : > { %p1026_p10 = pneg %p1025_p9 }
 0x2d8   : > { %p1032_p1 = por %p1031_p0, %p1030_p13 }
 0x2da   : > { %p1033_p2 = pnand %p1032_p1, %p1026_p10 }
 0x2dc   : > { %1036 = shalt.err (!%p1033_p2)
}
 0x2dd   : > { %s1075_s18 = smov 128   ;;  %s1076_s28 = smov 384  }
 0x2de   : > { %s1077_s22 = smov 8  }
 0x2df   : > { %964 = dma.vmem_to_hbm [thread:$0]  (%p1156_p6), %s1277_s15, 256, %s1282_s19, %s749_s21, %s1075_s18, %s1076_s28, %s1077_s22  }
 0x2e0 PF: > { %p970_p3 = scmp.ge.s32.totalorder %s1071_s27, 2  ;;  %s776_s23 = sand.u32 1, %s1059_s24  }
 0x2e1   : > { %s777_s29 = scalar_lea.sflag [#allocation4], %s776_s23 }
 0x2e2   : > { %p967_p4 = pnand %p970_p3, %p1160_p8 }
 0x2e4   : > { %1054 = dma.done.wait (!%p967_p4), %s777_s29, 256  }
 0x2e5   : > { %1056 = vsyncadd (!%p967_p4), %s777_s29, 4294967040  ;;  %p17_p5 = scmp.ge.s32.totalorder %s1141_s30, 5   ;;  %s1335_s24 = smov %s1063_s25 }
 0x2e6   : > { %s1336_s25 = smov %s1067_s26  ;;  %s1337_s26 = smov %s1154_s10 }
 0x2e7   : > { %s1338_s27 = smov %s1141_s30  ;;  %19 = sbr.rel (!%p17_p5) target bundleno = 3 (0x3), region = 126 }
 0x2ee   :  { %782 = vsyncpa [#allocation4], 1 }
 0x2ef   :  { %784 = vsyncpa [#allocation4 + $0x1], 1 }

</bundles_post_ra>
